<compile_context>
chip_gen: v6e
topology: v6e:2x2x1
jax: 0.10.0
libtpu: 0.0.40
codegen_flags: <defaults>
</compile_context>

<pallas_src>
import math

import jax
import jax.numpy as jnp
from jax.experimental import pallas as pl
from jax.experimental.pallas import tpu as pltpu


def _round_up(x: int, m: int) -> int:
    return ((x + m - 1) // m) * m


def _cdiv(a: int, b: int) -> int:
    return -(-a // b)


def _fit_tile(dim: int, tile: int, align: int) -> int:
    """Clamp `tile` to `dim`, keep it a multiple of `align`, bound pad waste.

    E.g. dim=300, tile=256, align=8 -> 152 (two tiles, 4 padded rows) instead
    of padding 300 up to 512 (70% wasted MXU work / HBM traffic).
    """
    tile = max(align, _round_up(min(tile, dim), align))
    n_tiles = _cdiv(dim, tile)
    return max(align, _round_up(_cdiv(dim, n_tiles), align))


def _make_linear_kernel(has_bias: bool, use_acc_scratch: bool):
    """Build the matmul kernel.

    Grid is (M-tiles, N-tiles, K-tiles) with K innermost ("arbitrary").
    If use_acc_scratch is False (f32 output), accumulation happens directly in
    the resident output block; otherwise an f32 VMEM scratch is used and the
    result is cast on the last K step.
    """

    def kernel(*refs):
        if has_bias:
            x_ref, w_ref, b_ref, o_ref = refs[:4]
            rest = refs[4:]
        else:
            x_ref, w_ref, o_ref = refs[:3]
            rest = refs[3:]
        acc_ref = rest[0] if use_acc_scratch else o_ref

        k = pl.program_id(2)

        @pl.when(k == 0)
        def _():
            acc_ref[...] = jnp.zeros_like(acc_ref)

        acc_ref[...] += jnp.dot(
            x_ref[...], w_ref[...], preferred_element_type=jnp.float32
        )

        if use_acc_scratch or has_bias:

            @pl.when(k == pl.num_programs(2) - 1)
            def _():
                out = acc_ref[...]
                if has_bias:
                    out = out + b_ref[...].astype(jnp.float32)
                o_ref[...] = out.astype(o_ref.dtype)

    return kernel


def prepare_linear_projection_weights(
    weight_t, bias=None, compute_dtype=jnp.bfloat16
):
    """Pre-cast the weight ONCE (outside the per-call hot path).

    Casting the (K, N) weight inside every forward call costs a full extra
    HBM read+write that is not overlapped with the Pallas pipeline; do it
    once at load time instead.  Bias stays f32 (it is added in f32).
    """
    w = weight_t if compute_dtype is None else weight_t.astype(compute_dtype)
    b = None if bias is None else bias.astype(jnp.float32)
    return w, b


def linear_projection(
    x,
    weight_t,
    bias=None,
    *,
    tm: int = 512,
    tn: int = 1024,
    tk: int = 512,
    compute_dtype=jnp.bfloat16,
    vmem_limit_bytes: int = 48 << 20,
):
    """y = x @ weight_t (+ bias) as a tiled Pallas TPU matmul.

    Args:
      x: (batch, seq_len, in_features)
      weight_t: (in_features, out_features) -- transpose of torch Linear.weight
      bias: optional (out_features,), always accumulated in f32
      tm, tn, tk: tile sizes.  Defaults (512, 1024, 512) are compute-bound on
        v5e/v7x and near it on v6e; for large layers on v6e use tm=tn=1024.
        Values are snapped to (8, 128) multiples and clamped for small dims.
      compute_dtype: MXU operand dtype.  bf16 (default) keeps f32 accumulation
        and f32 output; pass jnp.float32 / None for the exact fp32 path.
      vmem_limit_bytes: scoped VMEM limit (48 MiB is safe on v5e/v6e (128 MiB
        physical) and v7x (64 MiB physical)).

    Returns:
      (batch, seq_len, out_features) in x.dtype
    """
    B, S, K = x.shape
    K2, N = weight_t.shape
    assert K == K2, f"in_features mismatch: {K} vs {K2}"
    out_dtype = x.dtype
    M = B * S

    if compute_dtype is None:
        compute_dtype = x.dtype
    compute_dtype = jnp.dtype(compute_dtype)

    if x.dtype != compute_dtype:
        x = x.astype(compute_dtype)
    if weight_t.dtype != compute_dtype:
        # Perf note: pre-cast once via prepare_linear_projection_weights() to
        # avoid this extra HBM pass over the weight on every call.
        weight_t = weight_t.astype(compute_dtype)
    if bias is not None and bias.dtype != jnp.float32:
        bias = bias.astype(jnp.float32)  # bias stays f32, never narrowed

    # Snap tiles to (8, 128)-aligned sizes with bounded padding waste.
    tm = _fit_tile(M, tm, 8)
    tn = _fit_tile(N, tn, 128)
    tk = _fit_tile(K, tk, 128)

    Mp = _round_up(M, tm)
    Np = _round_up(N, tn)
    Kp = _round_up(K, tk)

    # v7x has 2 TensorCores: ensure >= 2 (i, j) output tiles so both cores get
    # work under the "parallel" dimension semantics (no-op on v5e/v6e).
    while (Mp // tm) * (Np // tn) < 2 and tn > 128:
        tn = _round_up(tn // 2, 128)
        Np = _round_up(N, tn)

    x2d = x.reshape(M, K)
    if (Mp, Kp) != (M, K):
        # K padding must be zeros for reduction correctness; M/N padding is
        # sliced off below.
        x2d = jnp.pad(x2d, ((0, Mp - M), (0, Kp - K)))
    w2d = weight_t
    if (Kp, Np) != (K, N):
        w2d = jnp.pad(w2d, ((0, Kp - K), (0, Np - N)))

    grid = (Mp // tm, Np // tn, Kp // tk)
    gm, gn, _ = grid
    use_acc_scratch = out_dtype != jnp.float32

    x_spec = pl.BlockSpec((tm, tk), lambda i, j, k: (i, k))
    w_spec = pl.BlockSpec((tk, tn), lambda i, j, k: (k, j))
    o_spec = pl.BlockSpec((tm, tn), lambda i, j, k: (i, j))

    in_specs = [x_spec, w_spec]
    operands = [x2d, w2d]
    if bias is not None:
        b2d = bias.reshape(1, N)
        if Np != N:
            b2d = jnp.pad(b2d, ((0, 0), (0, Np - N)))
        in_specs.append(pl.BlockSpec((1, tn), lambda i, j, k: (0, j)))
        operands.append(b2d)

    scratch_shapes = (
        [pltpu.VMEM((tm, tn), jnp.float32)] if use_acc_scratch else []
    )

    cd_elt = jnp.dtype(compute_dtype).itemsize
    out_elt = jnp.dtype(out_dtype).itemsize
    cost = pl.CostEstimate(
        flops=2 * M * N * K,
        transcendentals=0,
        # x is re-streamed once per N-tile, W once per M-tile.
        bytes_accessed=(gn * Mp * Kp + gm * Kp * Np) * cd_elt
        + Mp * Np * out_elt
        + (Np * 4 if bias is not None else 0),
    )

    kernel = _make_linear_kernel(bias is not None, use_acc_scratch)

    y2d = pl.pallas_call(
        kernel,
        out_shape=jax.ShapeDtypeStruct((Mp, Np), out_dtype),
        grid_spec=pltpu.PrefetchScalarGridSpec(
            num_scalar_prefetch=0,
            grid=grid,
            in_specs=in_specs,
            out_specs=o_spec,
            scratch_shapes=scratch_shapes,
        ),
        compiler_params=pltpu.CompilerParams(
            dimension_semantics=("parallel", "parallel", "arbitrary"),
            vmem_limit_bytes=vmem_limit_bytes,
        ),
        cost_estimate=cost,
    )(*operands)

    if (Mp, Np) != (M, N):
        y2d = y2d[:M, :N]
    return y2d.reshape(B, S, N)


def init_linear_projection_params(
    key, in_features, out_features, bias=False, dtype=jnp.float32
):
    """Xavier-normal weight (gain=1.0), zero bias — matches the module init."""
    std = math.sqrt(2.0 / (in_features + out_features))
    # Torch weight is (out, in); we keep its transpose (in, out) for the kernel.
    w_t = std * jax.random.normal(key, (in_features, out_features), dtype=dtype)
    b = jnp.zeros((out_features,), dtype=dtype) if bias else None
    return w_t, b


if __name__ == "__main__":
    key = jax.random.PRNGKey(0)
    k_x, k_w = jax.random.split(key)

    batch, seq_len = 2, 8
    in_features, out_features = 32, 64

    x = jax.random.normal(k_x, (batch, seq_len, in_features), dtype=jnp.float32)

    # --- bias=False (module default), default bf16 MXU path, f32 accumulation.
    w_t, b = init_linear_projection_params(
        k_w, in_features, out_features, bias=False
    )
    w_bf16, _ = prepare_linear_projection_weights(w_t)  # hoisted pre-cast
    y = jax.block_until_ready(linear_projection(x, w_bf16, b))
    y_ref = x @ w_t
    assert y.shape == (batch, seq_len, out_features)
    assert y.dtype == x.dtype
    assert jnp.allclose(y, y_ref, atol=5e-2, rtol=5e-2), float(
        jnp.max(jnp.abs(y - y_ref))
    )

    # --- bias=True, exact fp32 path (matches the fp32 torch module tightly).
    w_t2, b2 = init_linear_projection_params(
        k_w, in_features, out_features, bias=True
    )
    b2 = b2 + 0.5  # non-trivial bias so the add is actually exercised
    y2 = jax.block_until_ready(
        linear_projection(x, w_t2, b2, compute_dtype=jnp.float32)
    )
    y2_ref = x @ w_t2 + b2
    assert jnp.allclose(y2, y2_ref, atol=1e-5, rtol=1e-5)

    # --- bf16 activations in / bf16 out (exercises the scratch-accumulator
    # kernel variant used when the output dtype is narrower than f32).
    x_bf16 = x.astype(jnp.bfloat16)
    y3 = jax.block_until_ready(linear_projection(x_bf16, w_bf16, b))
    assert y3.dtype == jnp.bfloat16
    assert jnp.allclose(
        y3.astype(jnp.float32), y_ref, atol=5e-2, rtol=5e-2
    )

    print("KERNEL_OK")
</pallas_src>

<mosaic_0001>
module attributes {stable_mosaic.version = 11 : i64} {
  func.func @kernel(%arg0: i32, %arg1: i32, %arg2: i32, %arg3: memref<16x128xbf16, #tpu.memory_space<vmem>>, %arg4: memref<128x128xbf16, #tpu.memory_space<vmem>>, %arg5: memref<16x128xf32, #tpu.memory_space<vmem>>) attributes {dimension_semantics = [#tpu.dimension_semantics<parallel>, #tpu.dimension_semantics<parallel>, #tpu.dimension_semantics<arbitrary>], iteration_bounds = array<i64: 1, 1, 1>, scalar_prefetch = 0 : i64, scratch_operands = 0 : i64, tpu.core_type = #tpu.core_type<tc>, window_params = [{transform_indices = @transform_0, window_bounds = array<i64: 16, 128>}, {transform_indices = @transform_1, window_bounds = array<i64: 128, 128>}, {transform_indices = @transform_2, window_bounds = array<i64: 16, 128>}]} {
    %c0_i32 = arith.constant 0 : i32
    %0 = arith.cmpi eq, %arg2, %c0_i32 : i32
    %1 = arith.extui %0 : i1 to i32
    %c0_i32_0 = arith.constant 0 : i32
    %2 = arith.cmpi ne, %1, %c0_i32_0 : i32
    scf.if %2 {
      %cst_8 = arith.constant 0.000000e+00 : f32
      %9 = vector.broadcast %cst_8 : f32 to vector<16x128xf32>
      %c0_9 = arith.constant 0 : index
      %c0_10 = arith.constant 0 : index
      %10 = vector.load %arg5[%c0_9, %c0_10] : memref<16x128xf32, #tpu.memory_space<vmem>>, vector<16x128xf32>
      tpu.vector_store %arg5[%c0_9, %c0_10], %9 {strides = array<i32>} : memref<16x128xf32, #tpu.memory_space<vmem>>, vector<16x128xf32>,
    } else {
    }
    %c0 = arith.constant 0 : index
    %c0_1 = arith.constant 0 : index
    %3 = vector.load %arg5[%c0, %c0_1] : memref<16x128xf32, #tpu.memory_space<vmem>>, vector<16x128xf32>
    %c0_2 = arith.constant 0 : index
    %c0_3 = arith.constant 0 : index
    %4 = vector.load %arg3[%c0_2, %c0_3] : memref<16x128xbf16, #tpu.memory_space<vmem>>, vector<16x128xbf16>
    %c0_4 = arith.constant 0 : index
    %c0_5 = arith.constant 0 : index
    %5 = vector.load %arg4[%c0_4, %c0_5] : memref<128x128xbf16, #tpu.memory_space<vmem>>, vector<128x128xbf16>
    %cst = arith.constant dense<0.000000e+00> : vector<16x128xf32>
    %6 = tpu.matmul %4, %5, %cst {dimension_numbers = #tpu.dot_dimension_numbers<[1], [0], [0], [1], [0, 0, 1, 1], [], []>} : vector<16x128xbf16>, vector<128x128xbf16>, vector<16x128xf32> -> vector<16x128xf32>
    %7 = arith.addf %3, %6 : vector<16x128xf32>
    %c0_6 = arith.constant 0 : index
    %c0_7 = arith.constant 0 : index
    %8 = vector.load %arg5[%c0_6, %c0_7] : memref<16x128xf32, #tpu.memory_space<vmem>>, vector<16x128xf32>
    tpu.vector_store %arg5[%c0_6, %c0_7], %7 {strides = array<i32>} : memref<16x128xf32, #tpu.memory_space<vmem>>, vector<16x128xf32>,
    return
  }
  func.func @transform_0(%arg0: i32, %arg1: i32, %arg2: i32) -> (i32, i32) {
    %c0_i32 = arith.constant 0 : i32
    return %arg0, %arg2 : i32, i32
  }
  func.func @transform_1(%arg0: i32, %arg1: i32, %arg2: i32) -> (i32, i32) {
    %c0_i32 = arith.constant 0 : i32
    return %arg2, %arg1 : i32, i32
  }
  func.func @transform_2(%arg0: i32, %arg1: i32, %arg2: i32) -> (i32, i32) {
    %c0_i32 = arith.constant 0 : i32
    return %arg0, %arg1 : i32, i32
  }
}

</mosaic_0001>

<bundles_post_ra>
// kernel: tpu_custom_call.1
= control target key start
LH: loop header
LB: loop body
LE: loop exit
PB: predicated region body
PF: predicated region fallthrough
CT: control target
= control target key end

     0   :  { %7 = vsyncpa [#allocation3], 0  ;;  %s339_s0 = inlined_call_operand.hbm [shape: bf16[16,128], index: 0, kind: input, shape index: {}]   ;;  %s340_s1 = inlined_call_operand.hbm [shape: bf16[128,128], index: 1, kind: input, shape index: {}]   ;;  %s341_s2 = inlined_call_operand.hbm [shape: f32[16,128], index: 2, kind: output, shape index: {}]  }
   0x1   :  { %8 = vsyncpa [#allocation6], 0 }
   0x2   :  { %9 = vsyncpa [#allocation4], 0  ;;  %s306_s9 = smov [#allocation2]  }
   0x3   :  { %s15_s10 = sshll.u32 %s306_s9, 4  ;;  %s16_s10 = int_to_ptr.vmem [resolvable:$true] %s15_s10 }
   0x4   :  { %s248_s11 = scalar_lea.vmem %s16_s10, 128  ;;  %p253_p1 = scmp.lt.s32.totalorder %s16_s10, %s16_s10 }
   0x5   :  { %p249_p0 = scmp.ne.s32.totalorder %s16_s10, %s248_s11  ;;  %p254_p2 = scmp.lt.s32.totalorder %s248_s11, %s248_s11 }
   0x7   :  { %p255_p3 = por %p254_p2, %p253_p1 }
   0x9   :  { %p256_p4 = pnand %p255_p3, %p249_p0 }
   0xb   :  { %259 = shalt.err (!%p256_p4)
}
   0xc   :  { %s307_s12 = smov 64   ;;  %s308_s13 = smov 4  }
   0xd   :  { %21 = dma.hbm_to_vmem [thread:$0]  %s339_s0, 128, %s16_s10, [#allocation3], %s307_s12, %s307_s12, %s308_s13  }
   0xe   :  { %s309_s16 = smov [#allocation5]  }
   0xf   :  { %s27_s17 = sshll.u32 %s309_s16, 4  ;;  %s28_s17 = int_to_ptr.vmem [resolvable:$true] %s27_s17 }
  0x10   :  { %s268_s18 = scalar_lea.vmem %s28_s17, 1024  ;;  %p273_p6 = scmp.lt.s32.totalorder %s28_s17, %s28_s17 }
  0x11   :  { %p269_p5 = scmp.ne.s32.totalorder %s28_s17, %s268_s18  ;;  %p274_p7 = scmp.lt.s32.totalorder %s268_s18, %s268_s18 }
  0x13   :  { %p275_p8 = por %p274_p7, %p273_p6 }
  0x15   :  { %p276_p9 = pnand %p275_p8, %p269_p5 }
  0x17   :  { %279 = shalt.err (!%p276_p9)
}
  0x18   :  { %33 = dma.hbm_to_vmem [thread:$0]  %s340_s1, 1024, %s28_s17, [#allocation6], %s307_s12, %s307_s12, %s308_s13  }
  0x19   :  { %300 = dma.done.wait [#allocation3], 128  }
  0x1a   :  { %301 = vsyncadd [#allocation3], 4294967168 }
  0x1b   :  { %302 = dma.done.wait [#allocation6], 1024  }
  0x1c   :  { %303 = vsyncadd [#allocation6], 4294966272  ;;  %v310_v0 = vmov 0.0   ;;  %vm311_vm0 = vmmov 0   ;;  %v231_v1 = vld [vmem:[#allocation5 + $0x38] sm:$0xff]   ;;  %v232_v2 = vld [vmem:[#allocation5 + $0x30] sm:$0xff]  }
  0x1d   :  { %202 = vmatprep.subr.bf16.mxu0 %v310_v0  ;;  %218 = vmatprep.mubr.msk.bf16.mxu0 %vm311_vm0, %v310_v0  ;;  %v233_v3 = vld [vmem:[#allocation5 + $0x28] sm:$0xff]   ;;  %v234_v4 = vld [vmem:[#allocation5 + $0x20] sm:$0xff]   ;;  %v235_v5 = vld [vmem:[#allocation5 + $0x18] sm:$0xff]   ;;  %s312_s0 = smov [#allocation7]  }
  0x1e   :  { %203 = vmatpush3.bf16.msra.mxu0 %v231_v1  ;;  %v236_v6 = vld [vmem:[#allocation5 + $0x10] sm:$0xff]   ;;  %v237_v7 = vld [vmem:[#allocation5 + $0x8] sm:$0xff]   ;;  %v238_v8 = vld [vmem:[#allocation5] sm:$0xff]   ;;  %s171_s1 = sshll.u32 %s312_s0, 4  ;;  %s172_s1 = int_to_ptr.vmem [resolvable:$true] %s171_s1 }
  0x1f   :  { %204 = vmatprep.subr.bf16.mxu0 %v310_v0  ;;  %v239_v9 = vld [vmem:[#allocation2] sm:$0xff]   ;;  %s280_s21 = scalar_lea.vmem %s172_s1, 256  ;;  %p285_p11 = scmp.lt.s32.totalorder %s172_s1, %s172_s1 }
  0x20   :  { %p281_p10 = scmp.ne.s32.totalorder %s172_s1, %s280_s21  ;;  %p286_p12 = scmp.lt.s32.totalorder %s280_s21, %s280_s21 }
  0x22   :  { %205 = vmatpush3.bf16.msra.mxu0 %v232_v2  ;;  %p287_p13 = por %p286_p12, %p285_p11 }
  0x23   :  { %206 = vmatprep.subr.bf16.mxu0 %v310_v0 }
  0x24   :  { %p288_p0 = pnand %p287_p13, %p281_p10 }
  0x26   :  { %207 = vmatpush3.bf16.msra.mxu0 %v233_v3 }
  0x27   :  { %208 = vmatprep.subr.bf16.mxu0 %v310_v0 }
  0x2a   :  { %209 = vmatpush3.bf16.msra.mxu0 %v234_v4 }
  0x2b   :  { %210 = vmatprep.subr.bf16.mxu0 %v310_v0 }
  0x2e   :  { %211 = vmatpush3.bf16.msra.mxu0 %v235_v5 }
  0x2f   :  { %212 = vmatprep.subr.bf16.mxu0 %v310_v0 }
  0x32   :  { %213 = vmatpush3.bf16.msra.mxu0 %v236_v6 }
  0x33   :  { %214 = vmatprep.subr.bf16.mxu0 %v310_v0 }
  0x36   :  { %215 = vmatpush3.bf16.msra.mxu0 %v237_v7 }
  0x37   :  { %216 = vmatprep.subr.bf16.mxu0 %v310_v0 }
  0x3a   :  { %217 = vmatpush3.bf16.msra.mxu0 %v238_v8 }
  0x3d   :  { %219 = vmatmul.mubr.bf16.vlgmr.msra.gmra.mxu0 %v239_v9 }
  0xfd   :  { %v155_v10 = vpop.f32.mrf.mxu0 }
  0xfe   :  { %164 = vst [vmem:[#allocation7] sm:$0xff] %v155_v10 }
  0xff   :  { %v220_v11 = vpop.f32.mrf.mxu0 }
 0x101   :  { %v158_v12 = vpop.f32.mrf.mxu0 }
 0x102   :  { %165 = vst [vmem:[#allocation7 + $0x8] sm:$0xff] %v158_v12 }
 0x103   :  { %v221_v13 = vpop.f32.mrf.mxu0 }
 0x104   :  { %291 = shalt.err (!%p288_p0)
}
 0x105   :  { %s313_s22 = smov 128   ;;  %s314_s23 = smov 8  }
 0x106   :  { %177 = dma.vmem_to_hbm [thread:$0]  %s172_s1, 256, %s341_s2, [#allocation4], %s313_s22, %s313_s22, %s314_s23  }
 0x107   :  { %304 = dma.done.wait [#allocation4], 256  }
 0x108   :  { %305 = vsyncadd [#allocation4], 4294967040 }
 0x109   :  { %181 = vsyncpa [#allocation3], 1 }
 0x10a   :  { %182 = vsyncpa [#allocation6], 1 }
 0x10b   :  { %183 = vsyncpa [#allocation4], 1 }

</bundles_post_ra>
